<compile_context>
chip_gen: v6e
topology: v6e:2x2x1
jax: 0.10.0
libtpu: 0.0.40
codegen_flags: <defaults>
</compile_context>

<pallas_src>
import functools

import jax
import jax.numpy as jnp
from jax.experimental import pallas as pl
from jax.experimental.pallas import tpu as pltpu

IN_DIM = 16
HID_DIM = 128
OUT_DIM = 32
OUT_PAD = 128          # lane-dense output width (>= OUT_DIM, multiple of 128)
NUM_LAYER = 4          # => num_layer + 1 = 5 hidden (ReLU) linears + 1 output linear


def _round_up(v, m):
    return ((v + m - 1) // m) * m


def _use_bf16_tail():
    """bf16 bias+ReLU tail only on generations with a bf16 VALU (v6e / v7x)."""
    try:
        kind = jax.devices()[0].device_kind.lower()
    except Exception:
        return False
    return ("v6" in kind) or ("v7" in kind)


def _mlp_kernel(x_ref, w0_ref, b0_ref, wh_ref, bh_ref, wo_ref, bo_ref, out_ref,
                *, bf16_tail):
    act_dt = jnp.bfloat16 if bf16_tail else jnp.float32

    def bias_relu(acc_f32, b):
        # b is already stored in act_dt by prepare_params().
        t = acc_f32.astype(act_dt) + b
        return jnp.maximum(t, 0).astype(jnp.bfloat16)

    # First linear: [tm, in] bf16 @ [in, hid] bf16 -> f32 accumulate.
    h = bias_relu(
        jnp.dot(x_ref[...].astype(jnp.bfloat16), w0_ref[...],
                preferred_element_type=jnp.float32),
        b0_ref[...])

    # Hidden linears: stacked weights [NUM_LAYER, hid, hid] (bf16), Python-unrolled.
    for l in range(NUM_LAYER):
        h = bias_relu(
            jnp.dot(h, wh_ref[l], preferred_element_type=jnp.float32),
            bh_ref[l])

    # Output linear (no activation); wo/bo zero-padded to OUT_PAD lanes.
    o = jnp.dot(h, wo_ref[...], preferred_element_type=jnp.float32)
    out_ref[...] = (o + bo_ref[...]).astype(out_ref.dtype)


@functools.partial(jax.jit, static_argnames=("tm", "bf16_tail"))
def mlp_forward(x, params, *, bf16_tail=False, tm=4096):
    """x: [B, N, C] float32 -> [B, N, OUT_DIM] float32.

    `params` must come from prepare_params() (kernel dtypes / padded shapes).
    """
    B, N, C = x.shape
    assert C == IN_DIM
    assert tm % 256 == 0, "row tile must be a multiple of 256"
    M = B * N
    x2 = x.reshape(M, C)

    # Effective row tile: big enough to amortize ~0.35us/step grid overhead,
    # small enough that (a) tiny M is not over-computed and (b) medium/large M
    # gives >= 2 blocks so v7x's two TensorCores both get work.
    tm_eff = min(tm,
                 _round_up(max((M + 1) // 2, 8), 256),
                 _round_up(M, 8))
    n_blocks = pl.cdiv(M, tm_eff)   # ragged last block handled by Pallas

    w0, b0, wh, bh, wo, bo = params
    const2 = lambda i: (0, 0)
    const3 = lambda i: (0, 0, 0)

    out = pl.pallas_call(
        functools.partial(_mlp_kernel, bf16_tail=bf16_tail),
        out_shape=jax.ShapeDtypeStruct((M, OUT_PAD), x.dtype),
        grid_spec=pltpu.PrefetchScalarGridSpec(
            num_scalar_prefetch=0,
            grid=(n_blocks,),
            in_specs=[
                pl.BlockSpec((tm_eff, C), lambda i: (i, 0)),                 # x tile
                pl.BlockSpec((C, HID_DIM), const2),                          # w0
                pl.BlockSpec((1, HID_DIM), const2),                          # b0
                pl.BlockSpec((NUM_LAYER, HID_DIM, HID_DIM), const3),         # wh
                pl.BlockSpec((NUM_LAYER, 1, HID_DIM), const3),               # bh
                pl.BlockSpec((HID_DIM, OUT_PAD), const2),                    # wo (padded)
                pl.BlockSpec((1, OUT_PAD), const2),                          # bo (padded)
            ],
            out_specs=pl.BlockSpec((tm_eff, OUT_PAD), lambda i: (i, 0)),
        ),
        compiler_params=pltpu.CompilerParams(
            dimension_semantics=("parallel",),
            vmem_limit_bytes=32 * 1024 * 1024),
    )(x2, w0, b0, wh, bh, wo, bo)

    # Drop the zero-padded output lanes (small fused slice+reshape outside kernel).
    return out[:, :OUT_DIM].reshape(B, N, OUT_DIM)


def init_params(key):
    """Deterministic init, shapes matching the PyTorch module (f32 master copy)."""
    ks = jax.random.split(key, 12)

    def lin_init(kw, kb, fan_in, fan_out):
        bound = 1.0 / jnp.sqrt(fan_in)
        w = jax.random.uniform(kw, (fan_in, fan_out), jnp.float32, -bound, bound)
        b = jax.random.uniform(kb, (fan_out,), jnp.float32, -bound, bound)
        return w, b

    w0, b0 = lin_init(ks[0], ks[1], IN_DIM, HID_DIM)
    whs, bhs = [], []
    for l in range(NUM_LAYER):
        w, b = lin_init(ks[2 + 2 * l], ks[3 + 2 * l], HID_DIM, HID_DIM)
        whs.append(w)
        bhs.append(b)
    wh = jnp.stack(whs, axis=0)
    bh = jnp.stack(bhs, axis=0)
    wo, bo = lin_init(ks[10], ks[11], HID_DIM, OUT_DIM)
    return (w0, b0, wh, bh, wo, bo)


def prepare_params(params, *, bf16_tail):
    """One-time cast/pad of f32 master params into kernel-resident dtypes."""
    w0, b0, wh, bh, wo, bo = params
    bias_dt = jnp.bfloat16 if bf16_tail else jnp.float32
    w0 = w0.astype(jnp.bfloat16)
    wh = wh.astype(jnp.bfloat16)
    wo_p = jnp.zeros((HID_DIM, OUT_PAD), jnp.bfloat16)
    wo_p = wo_p.at[:, :OUT_DIM].set(wo.astype(jnp.bfloat16))
    b0 = b0.reshape(1, HID_DIM).astype(bias_dt)
    bh = bh.reshape(NUM_LAYER, 1, HID_DIM).astype(bias_dt)
    bo_p = jnp.zeros((1, OUT_PAD), jnp.float32)
    bo_p = bo_p.at[:, :OUT_DIM].set(bo.astype(jnp.float32))
    return (w0, b0, wh, bh, wo_p, bo_p)


def mlp_ref_f32(x2, params):
    """Full-precision (f32) reference on the master params."""
    w0, b0, wh, bh, wo, bo = params
    h = jnp.maximum(x2 @ w0 + b0, 0.0)
    for l in range(NUM_LAYER):
        h = jnp.maximum(h @ wh[l] + bh[l], 0.0)
    return h @ wo + bo


def mlp_ref_kernel(x2, params, *, bf16_tail):
    """Reference mirroring the kernel's numerics exactly (from f32 master params)."""
    w0, b0, wh, bh, wo, bo = params
    bf = jnp.bfloat16
    act_dt = bf if bf16_tail else jnp.float32

    def dot(a, w):
        return jnp.dot(a.astype(bf), w.astype(bf),
                       preferred_element_type=jnp.float32)

    def bias_relu(acc, b):
        t = acc.astype(act_dt) + b.astype(act_dt)
        return jnp.maximum(t, 0).astype(bf)

    h = bias_relu(dot(x2, w0), b0)
    for l in range(NUM_LAYER):
        h = bias_relu(dot(h, wh[l]), bh[l])
    return dot(h, wo) + bo.astype(jnp.float32)


if __name__ == "__main__":
    key = jax.random.PRNGKey(0)
    kx, kp = jax.random.split(key)

    B, N, C = 2, 8, IN_DIM  # [B, N, C] input, B*N = 16 rows
    x = jax.random.normal(kx, (B, N, C), dtype=jnp.float32)

    bf16_tail = _use_bf16_tail()
    params = init_params(kp)
    kparams = prepare_params(params, bf16_tail=bf16_tail)

    out = mlp_forward(x, kparams, bf16_tail=bf16_tail)
    out = jax.block_until_ready(out)
    assert out.shape == (B, N, OUT_DIM), out.shape
    assert out.dtype == jnp.float32, out.dtype

    # Exact-numerics check (same precision policy as the kernel).
    ref_k = mlp_ref_kernel(x.reshape(-1, C), params,
                           bf16_tail=bf16_tail).reshape(B, N, OUT_DIM)
    assert jnp.allclose(out, ref_k, atol=2e-3, rtol=2e-3), (
        float(jnp.max(jnp.abs(out - ref_k))))

    # Loose sanity check against the full-f32 reference (bf16 matmul inputs).
    ref_32 = mlp_ref_f32(x.reshape(-1, C), params).reshape(B, N, OUT_DIM)
    assert jnp.allclose(out, ref_32, atol=1e-1, rtol=1e-1), (
        float(jnp.max(jnp.abs(out - ref_32))))

    print("KERNEL_OK")
</pallas_src>

<mosaic_0001>
module attributes {stable_mosaic.version = 11 : i64} {
  func.func @_mlp_kernel(%arg0: i32, %arg1: memref<16x16xf32, #tpu.memory_space<vmem>>, %arg2: memref<16x128xbf16, #tpu.memory_space<vmem>>, %arg3: memref<1x128xf32, #tpu.memory_space<vmem>>, %arg4: memref<4x128x128xbf16, #tpu.memory_space<vmem>>, %arg5: memref<4x1x128xf32, #tpu.memory_space<vmem>>, %arg6: memref<128x128xbf16, #tpu.memory_space<vmem>>, %arg7: memref<1x128xf32, #tpu.memory_space<vmem>>, %arg8: memref<16x128xf32, #tpu.memory_space<vmem>>) attributes {dimension_semantics = [#tpu.dimension_semantics<parallel>], iteration_bounds = array<i64: 1>, scalar_prefetch = 0 : i64, scratch_operands = 0 : i64, tpu.core_type = #tpu.core_type<tc>, window_params = [{transform_indices = @transform_0, window_bounds = array<i64: 16, 16>}, {pipeline_mode = #tpu.pipeline_mode<synchronous>, transform_indices = @transform_1, window_bounds = array<i64: 16, 128>}, {pipeline_mode = #tpu.pipeline_mode<synchronous>, transform_indices = @transform_2, window_bounds = array<i64: 1, 128>}, {pipeline_mode = #tpu.pipeline_mode<synchronous>, transform_indices = @transform_3, window_bounds = array<i64: 4, 128, 128>}, {pipeline_mode = #tpu.pipeline_mode<synchronous>, transform_indices = @transform_4, window_bounds = array<i64: 4, 1, 128>}, {pipeline_mode = #tpu.pipeline_mode<synchronous>, transform_indices = @transform_5, window_bounds = array<i64: 128, 128>}, {pipeline_mode = #tpu.pipeline_mode<synchronous>, transform_indices = @transform_6, window_bounds = array<i64: 1, 128>}, {transform_indices = @transform_7, window_bounds = array<i64: 16, 128>}]} {
    %c0 = arith.constant 0 : index
    %c0_0 = arith.constant 0 : index
    %0 = vector.load %arg1[%c0, %c0_0] : memref<16x16xf32, #tpu.memory_space<vmem>>, vector<16x16xf32>
    %1 = arith.truncf %0 : vector<16x16xf32> to vector<16x16xbf16>
    %c0_1 = arith.constant 0 : index
    %c0_2 = arith.constant 0 : index
    %2 = vector.load %arg2[%c0_1, %c0_2] : memref<16x128xbf16, #tpu.memory_space<vmem>>, vector<16x128xbf16>
    %cst = arith.constant dense<0.000000e+00> : vector<16x128xf32>
    %3 = tpu.matmul %1, %2, %cst {dimension_numbers = #tpu.dot_dimension_numbers<[1], [0], [0], [1], [0, 0, 1, 1], [], []>} : vector<16x16xbf16>, vector<16x128xbf16>, vector<16x128xf32> -> vector<16x128xf32>
    %c0_3 = arith.constant 0 : index
    %c0_4 = arith.constant 0 : index
    %4 = vector.load %arg3[%c0_3, %c0_4] : memref<1x128xf32, #tpu.memory_space<vmem>>, vector<1x128xf32>
    %5 = vector.broadcast %4 : vector<1x128xf32> to vector<16x128xf32>
    %6 = arith.addf %3, %5 : vector<16x128xf32>
    %cst_5 = arith.constant 0.000000e+00 : f32
    %7 = vector.broadcast %cst_5 : f32 to vector<16x128xf32>
    %8 = arith.maximumf %6, %7 : vector<16x128xf32>
    %9 = arith.truncf %8 : vector<16x128xf32> to vector<16x128xbf16>
    %c0_6 = arith.constant 0 : index
    %c0_7 = arith.constant 0 : index
    %c0_8 = arith.constant 0 : index
    %10 = vector.load %arg4[%c0_6, %c0_7, %c0_8] : memref<4x128x128xbf16, #tpu.memory_space<vmem>>, vector<1x128x128xbf16>
    %11 = vector.shape_cast %10 : vector<1x128x128xbf16> to vector<128x128xbf16>
    %cst_9 = arith.constant dense<0.000000e+00> : vector<16x128xf32>
    %12 = tpu.matmul %9, %11, %cst_9 {dimension_numbers = #tpu.dot_dimension_numbers<[1], [0], [0], [1], [0, 0, 1, 1], [], []>} : vector<16x128xbf16>, vector<128x128xbf16>, vector<16x128xf32> -> vector<16x128xf32>
    %c0_10 = arith.constant 0 : index
    %c0_11 = arith.constant 0 : index
    %c0_12 = arith.constant 0 : index
    %13 = vector.load %arg5[%c0_10, %c0_11, %c0_12] : memref<4x1x128xf32, #tpu.memory_space<vmem>>, vector<1x1x128xf32>
    %14 = vector.shape_cast %13 : vector<1x1x128xf32> to vector<1x128xf32>
    %15 = vector.broadcast %14 : vector<1x128xf32> to vector<16x128xf32>
    %16 = arith.addf %12, %15 : vector<16x128xf32>
    %cst_13 = arith.constant 0.000000e+00 : f32
    %17 = vector.broadcast %cst_13 : f32 to vector<16x128xf32>
    %18 = arith.maximumf %16, %17 : vector<16x128xf32>
    %19 = arith.truncf %18 : vector<16x128xf32> to vector<16x128xbf16>
    %c1 = arith.constant 1 : index
    %c0_14 = arith.constant 0 : index
    %c0_15 = arith.constant 0 : index
    %20 = vector.load %arg4[%c1, %c0_14, %c0_15] : memref<4x128x128xbf16, #tpu.memory_space<vmem>>, vector<1x128x128xbf16>
    %21 = vector.shape_cast %20 : vector<1x128x128xbf16> to vector<128x128xbf16>
    %cst_16 = arith.constant dense<0.000000e+00> : vector<16x128xf32>
    %22 = tpu.matmul %19, %21, %cst_16 {dimension_numbers = #tpu.dot_dimension_numbers<[1], [0], [0], [1], [0, 0, 1, 1], [], []>} : vector<16x128xbf16>, vector<128x128xbf16>, vector<16x128xf32> -> vector<16x128xf32>
    %c1_17 = arith.constant 1 : index
    %c0_18 = arith.constant 0 : index
    %c0_19 = arith.constant 0 : index
    %23 = vector.load %arg5[%c1_17, %c0_18, %c0_19] : memref<4x1x128xf32, #tpu.memory_space<vmem>>, vector<1x1x128xf32>
    %24 = vector.shape_cast %23 : vector<1x1x128xf32> to vector<1x128xf32>
    %25 = vector.broadcast %24 : vector<1x128xf32> to vector<16x128xf32>
    %26 = arith.addf %22, %25 : vector<16x128xf32>
    %cst_20 = arith.constant 0.000000e+00 : f32
    %27 = vector.broadcast %cst_20 : f32 to vector<16x128xf32>
    %28 = arith.maximumf %26, %27 : vector<16x128xf32>
    %29 = arith.truncf %28 : vector<16x128xf32> to vector<16x128xbf16>
    %c2 = arith.constant 2 : index
    %c0_21 = arith.constant 0 : index
    %c0_22 = arith.constant 0 : index
    %30 = vector.load %arg4[%c2, %c0_21, %c0_22] : memref<4x128x128xbf16, #tpu.memory_space<vmem>>, vector<1x128x128xbf16>
    %31 = vector.shape_cast %30 : vector<1x128x128xbf16> to vector<128x128xbf16>
    %cst_23 = arith.constant dense<0.000000e+00> : vector<16x128xf32>
    %32 = tpu.matmul %29, %31, %cst_23 {dimension_numbers = #tpu.dot_dimension_numbers<[1], [0], [0], [1], [0, 0, 1, 1], [], []>} : vector<16x128xbf16>, vector<128x128xbf16>, vector<16x128xf32> -> vector<16x128xf32>
    %c2_24 = arith.constant 2 : index
    %c0_25 = arith.constant 0 : index
    %c0_26 = arith.constant 0 : index
    %33 = vector.load %arg5[%c2_24, %c0_25, %c0_26] : memref<4x1x128xf32, #tpu.memory_space<vmem>>, vector<1x1x128xf32>
    %34 = vector.shape_cast %33 : vector<1x1x128xf32> to vector<1x128xf32>
    %35 = vector.broadcast %34 : vector<1x128xf32> to vector<16x128xf32>
    %36 = arith.addf %32, %35 : vector<16x128xf32>
    %cst_27 = arith.constant 0.000000e+00 : f32
    %37 = vector.broadcast %cst_27 : f32 to vector<16x128xf32>
    %38 = arith.maximumf %36, %37 : vector<16x128xf32>
    %39 = arith.truncf %38 : vector<16x128xf32> to vector<16x128xbf16>
    %c3 = arith.constant 3 : index
    %c0_28 = arith.constant 0 : index
    %c0_29 = arith.constant 0 : index
    %40 = vector.load %arg4[%c3, %c0_28, %c0_29] : memref<4x128x128xbf16, #tpu.memory_space<vmem>>, vector<1x128x128xbf16>
    %41 = vector.shape_cast %40 : vector<1x128x128xbf16> to vector<128x128xbf16>
    %cst_30 = arith.constant dense<0.000000e+00> : vector<16x128xf32>
    %42 = tpu.matmul %39, %41, %cst_30 {dimension_numbers = #tpu.dot_dimension_numbers<[1], [0], [0], [1], [0, 0, 1, 1], [], []>} : vector<16x128xbf16>, vector<128x128xbf16>, vector<16x128xf32> -> vector<16x128xf32>
    %c3_31 = arith.constant 3 : index
    %c0_32 = arith.constant 0 : index
    %c0_33 = arith.constant 0 : index
    %43 = vector.load %arg5[%c3_31, %c0_32, %c0_33] : memref<4x1x128xf32, #tpu.memory_space<vmem>>, vector<1x1x128xf32>
    %44 = vector.shape_cast %43 : vector<1x1x128xf32> to vector<1x128xf32>
    %45 = vector.broadcast %44 : vector<1x128xf32> to vector<16x128xf32>
    %46 = arith.addf %42, %45 : vector<16x128xf32>
    %cst_34 = arith.constant 0.000000e+00 : f32
    %47 = vector.broadcast %cst_34 : f32 to vector<16x128xf32>
    %48 = arith.maximumf %46, %47 : vector<16x128xf32>
    %49 = arith.truncf %48 : vector<16x128xf32> to vector<16x128xbf16>
    %c0_35 = arith.constant 0 : index
    %c0_36 = arith.constant 0 : index
    %50 = vector.load %arg6[%c0_35, %c0_36] : memref<128x128xbf16, #tpu.memory_space<vmem>>, vector<128x128xbf16>
    %cst_37 = arith.constant dense<0.000000e+00> : vector<16x128xf32>
    %51 = tpu.matmul %49, %50, %cst_37 {dimension_numbers = #tpu.dot_dimension_numbers<[1], [0], [0], [1], [0, 0, 1, 1], [], []>} : vector<16x128xbf16>, vector<128x128xbf16>, vector<16x128xf32> -> vector<16x128xf32>
    %c0_38 = arith.constant 0 : index
    %c0_39 = arith.constant 0 : index
    %52 = vector.load %arg7[%c0_38, %c0_39] : memref<1x128xf32, #tpu.memory_space<vmem>>, vector<1x128xf32>
    %53 = vector.broadcast %52 : vector<1x128xf32> to vector<16x128xf32>
    %54 = arith.addf %51, %53 : vector<16x128xf32>
    %c0_40 = arith.constant 0 : index
    %c0_41 = arith.constant 0 : index
    %55 = vector.load %arg8[%c0_40, %c0_41] : memref<16x128xf32, #tpu.memory_space<vmem>>, vector<16x128xf32>
    tpu.vector_store %arg8[%c0_40, %c0_41], %54 {strides = array<i32>} : memref<16x128xf32, #tpu.memory_space<vmem>>, vector<16x128xf32>,
    return
  }
  func.func @transform_0(%arg0: i32) -> (i32, i32) {
    %c0_i32 = arith.constant 0 : i32
    %c0_i32_0 = arith.constant 0 : i32
    return %arg0, %c0_i32 : i32, i32
  }
  func.func @transform_1(%arg0: i32) -> (i32, i32) {
    %c0_i32 = arith.constant 0 : i32
    %c0_i32_0 = arith.constant 0 : i32
    %c0_i32_1 = arith.constant 0 : i32
    return %c0_i32, %c0_i32_0 : i32, i32
  }
  func.func @transform_2(%arg0: i32) -> (i32, i32) {
    %c0_i32 = arith.constant 0 : i32
    %c0_i32_0 = arith.constant 0 : i32
    %c0_i32_1 = arith.constant 0 : i32
    return %c0_i32, %c0_i32_0 : i32, i32
  }
  func.func @transform_3(%arg0: i32) -> (i32, i32, i32) {
    %c0_i32 = arith.constant 0 : i32
    %c0_i32_0 = arith.constant 0 : i32
    %c0_i32_1 = arith.constant 0 : i32
    %c0_i32_2 = arith.constant 0 : i32
    return %c0_i32, %c0_i32_0, %c0_i32_1 : i32, i32, i32
  }
  func.func @transform_4(%arg0: i32) -> (i32, i32, i32) {
    %c0_i32 = arith.constant 0 : i32
    %c0_i32_0 = arith.constant 0 : i32
    %c0_i32_1 = arith.constant 0 : i32
    %c0_i32_2 = arith.constant 0 : i32
    return %c0_i32, %c0_i32_0, %c0_i32_1 : i32, i32, i32
  }
  func.func @transform_5(%arg0: i32) -> (i32, i32) {
    %c0_i32 = arith.constant 0 : i32
    %c0_i32_0 = arith.constant 0 : i32
    %c0_i32_1 = arith.constant 0 : i32
    return %c0_i32, %c0_i32_0 : i32, i32
  }
  func.func @transform_6(%arg0: i32) -> (i32, i32) {
    %c0_i32 = arith.constant 0 : i32
    %c0_i32_0 = arith.constant 0 : i32
    %c0_i32_1 = arith.constant 0 : i32
    return %c0_i32, %c0_i32_0 : i32, i32
  }
  func.func @transform_7(%arg0: i32) -> (i32, i32) {
    %c0_i32 = arith.constant 0 : i32
    %c0_i32_0 = arith.constant 0 : i32
    return %arg0, %c0_i32 : i32, i32
  }
}

</mosaic_0001>

<bundles_post_ra>
// kernel: mlp_forward.1
= control target key start
LH: loop header
LB: loop body
LE: loop exit
PB: predicated region body
PF: predicated region fallthrough
CT: control target
= control target key end

     0   :  { %12 = vsyncpa [#allocation3], 0  ;;  %s1224_s0 = inlined_call_operand.hbm [shape: f32[16,16], index: 0, kind: input, shape index: {}]   ;;  %s1225_s1 = inlined_call_operand.hbm [shape: bf16[16,128], index: 1, kind: input, shape index: {}]   ;;  %s1226_s2 = inlined_call_operand.vmem [shape: f32[1,128], index: 2, kind: input, shape index: {}]   ;;  %s1227_s3 = inlined_call_operand.hbm [shape: bf16[4,128,128], index: 3, kind: input, shape index: {}]   ;;  %s1228_s4 = inlined_call_operand.vmem [shape: f32[4,1,128], index: 4, kind: input, shape index: {}]   ;;  %s1229_s5 = inlined_call_operand.hbm [shape: bf16[128,128], index: 5, kind: input, shape index: {}]   ;;  %s1230_s6 = inlined_call_operand.vmem [shape: f32[1,128], index: 6, kind: input, shape index: {}]   ;;  %s1231_s7 = inlined_call_operand.vmem [shape: f32[16,128], index: 7, kind: output, shape index: {}]  }
   0x1   :  { %13 = vsyncpa [#allocation5], 0 }
   0x2   :  { %14 = vsyncpa [#allocation8], 0  ;;  %s1076_s24 = smov [#allocation4]  }
   0x3   :  { %s32_s25 = sshll.u32 %s1076_s24, 4  ;;  %s33_s25 = int_to_ptr.vmem [resolvable:$true] %s32_s25 }
   0x4   :  { %s998_s26 = scalar_lea.vmem %s33_s25, 128  ;;  %p1003_p1 = scmp.lt.s32.totalorder %s33_s25, %s33_s25 }
   0x5   :  { %p999_p0 = scmp.ne.s32.totalorder %s33_s25, %s998_s26  ;;  %p1004_p2 = scmp.lt.s32.totalorder %s998_s26, %s998_s26 }
   0x7   :  { %p1005_p3 = por %p1004_p2, %p1003_p1 }
   0x9   :  { %p1006_p4 = pnand %p1005_p3, %p999_p0 }
   0xb   :  { %1009 = shalt.err (!%p1006_p4)
}
   0xc   :  { %s1077_s27 = smov 64   ;;  %s1078_s28 = smov 4  }
   0xd   :  { %38 = dma.hbm_to_vmem [thread:$0]  %s1225_s1, 128, %s33_s25, [#allocation5], %s1077_s27, %s1077_s27, %s1078_s28  }
   0xe   :  { %s1079_s8 = smov [#allocation2]  }
   0xf   :  { %s20_s9 = sshll.u32 %s1079_s8, 4  ;;  %s21_s9 = int_to_ptr.vmem [resolvable:$true] %s20_s9 }
  0x10   :  { %s1018_s10 = scalar_lea.vmem %s21_s9, 256  ;;  %p1023_p6 = scmp.lt.s32.totalorder %s21_s9, %s21_s9 }
  0x11   :  { %p1019_p5 = scmp.ne.s32.totalorder %s21_s9, %s1018_s10  ;;  %p1024_p7 = scmp.lt.s32.totalorder %s1018_s10, %s1018_s10 }
  0x13   :  { %p1025_p8 = por %p1024_p7, %p1023_p6 }
  0x15   :  { %p1026_p9 = pnand %p1025_p8, %p1019_p5 }
  0x17   :  { %1029 = shalt.err (!%p1026_p9)
}
  0x18   :  { %s1080_s11 = smov 128   ;;  %s1081_s12 = smov 8  }
  0x19   :  { %26 = dma.hbm_to_vmem [thread:$0]  %s1224_s0, 256, %s21_s9, [#allocation3], %s1080_s11, %s1080_s11, %s1081_s12  }
  0x1a   :  { %s1082_s15 = smov [#allocation6]   ;;  %s1083_s17 = smov [#allocation7]  }
  0x1b   :  { %s46_s16 = sshll.u32 %s1082_s15, 4  ;;  %s60_s1 = sshll.u32 %s1083_s17, 4  ;;  %s47_s16 = int_to_ptr.vmem [resolvable:$true] %s46_s16  ;;  %s61_s1 = int_to_ptr.vmem [resolvable:$true] %s60_s1 }
  0x1c   :  { %s1038_s18 = scalar_lea.vmem %s47_s16, 4096  ;;  %p1043_p11 = scmp.lt.s32.totalorder %s47_s16, %s47_s16 }
  0x1d   :  { %p1039_p10 = scmp.ne.s32.totalorder %s47_s16, %s1038_s18  ;;  %p1044_p12 = scmp.lt.s32.totalorder %s1038_s18, %s1038_s18 }
  0x1f   :  { %p1045_p13 = por %p1044_p12, %p1043_p11 }
  0x21   :  { %p1046_p0 = pnand %p1045_p13, %p1039_p10 }
  0x23   :  { %1049 = shalt.err (!%p1046_p0)
}
  0x24   :  { %52 = dma.hbm_to_vmem [thread:$0]  %s1227_s3, 4096, %s47_s16, [#allocation5], %s1077_s27, %s1077_s27, %s1078_s28  }
  0x25   :  { %s1058_s0 = scalar_lea.vmem %s61_s1, 1024  ;;  %p1063_p2 = scmp.lt.s32.totalorder %s61_s1, %s61_s1 }
  0x26   :  { %p1059_p1 = scmp.ne.s32.totalorder %s61_s1, %s1058_s0  ;;  %p1064_p3 = scmp.lt.s32.totalorder %s1058_s0, %s1058_s0 }
  0x28   :  { %p1065_p4 = por %p1064_p3, %p1063_p2 }
  0x2a   :  { %p1066_p5 = pnand %p1065_p4, %p1059_p1 }
  0x2c   :  { %1069 = shalt.err (!%p1066_p5)
}
  0x2d   :  { %66 = dma.hbm_to_vmem [thread:$0]  %s1229_s5, 1024, %s61_s1, [#allocation8], %s1077_s27, %s1077_s27, %s1078_s28  }
  0x2e   :  { %1070 = dma.done.wait [#allocation3], 256  }
  0x2f   :  { %1071 = vsyncadd [#allocation3], 4294967040 }
  0x30   :  { %1072 = dma.done.wait [#allocation5], 4224  }
  0x31   :  { %1073 = vsyncadd [#allocation5], 4294963072 }
  0x32   :  { %1074 = dma.done.wait [#allocation8], 1024  }
  0x33   :  { %1075 = vsyncadd [#allocation8], 4294966272  ;;  %v1084_v0 = vmov 0.0   ;;  %vm1085_vm0 = vmmov 0   ;;  %v949_v1 = vld [vmem:[#allocation4] sm:$0xff]   ;;  %v82_v2 = vld [vmem:[#allocation2] sm:$0xff] }
  0x34   :  { %833 = vmatprep.subr.bf16.mxu0 %v1084_v0  ;;  %835 = vmatprep.mubr.msk.bf16.mxu0 %vm1085_vm0, %v1084_v0  ;;  %v83_v3 = vld [vmem:[#allocation2 + $0x8] sm:$0xff]  ;;  %vm100_vm1 = vcmask 130048   ;;  %v950_v5 = vld [vmem:[#allocation6 + $0x38] sm:$0xff]   ;;  %v952_v7 = vld [vmem:[#allocation6 + $0x28] sm:$0xff]  }
  0x35   :  { %839 = vmatprep.subr.bf16.mxu1 %v1084_v0  ;;  %855 = vmatprep.mubr.msk.bf16.mxu1 %vm1085_vm0, %v1084_v0  ;;  %v84_v4 = vpack.c.bf16 %v83_v3, %v82_v2  ;;  %v951_v6 = vld [vmem:[#allocation6 + $0x30] sm:$0xff]   ;;  %v953_v8 = vld [vmem:[#allocation6 + $0x20] sm:$0xff]   ;;  %v954_v9 = vld [vmem:[#allocation6 + $0x18] sm:$0xff]  }
  0x36   :  { %834 = vmatpush3.bf16.msra.mxu0 %v949_v1  ;;  %840 = vmatpush3.bf16.msra.mxu1 %v950_v5  ;;  %v955_v10 = vld [vmem:[#allocation6 + $0x10] sm:$0xff]   ;;  %v956_v11 = vld [vmem:[#allocation6 + $0x8] sm:$0xff]   ;;  %v957_v12 = vld [vmem:[#allocation6] sm:$0xff]  }
  0x37   :  { %859 = vmatprep.subr.bf16.mxu0 %v1084_v0  ;;  %841 = vmatprep.subr.bf16.mxu1 %v1084_v0  ;;  %v958_v13 = vld [vmem:[#allocation6 + $0x78] sm:$0xff]   ;;  %v959_v14 = vld [vmem:[#allocation6 + $0x70] sm:$0xff]   ;;  %v960_v15 = vld [vmem:[#allocation6 + $0x68] sm:$0xff]  }
  0x38   :  { %v961_v16 = vld [vmem:[#allocation6 + $0x60] sm:$0xff]   ;;  %v962_v17 = vld [vmem:[#allocation6 + $0x58] sm:$0xff]   ;;  %v735_v18 = vld [vmem:[%s1226_s2] ss:$0 sm:$0xff] }
  0x39   :  { %836 = vmatmul.mubr.msk.bf16.vlgmr.msra.gmra.mxu0 %vm100_vm1, %v84_v4  ;;  %v963_v28 = vld [vmem:[#allocation6 + $0x50] sm:$0xff]   ;;  %v964_v29 = vld [vmem:[#allocation6 + $0x48] sm:$0xff]   ;;  %v965_v30 = vld [vmem:[#allocation6 + $0x40] sm:$0xff]  }
  0x3a   :  { %875 = vmatprep.mubr.msk.bf16.mxu0 %vm1085_vm0, %v1084_v0  ;;  %842 = vmatpush3.bf16.msra.mxu1 %v951_v6  ;;  %v966_v31 = vld [vmem:[#allocation6 + $0xb8] sm:$0xff]   ;;  %v967_v32 = vld [vmem:[#allocation6 + $0xb0] sm:$0xff]   ;;  %v968_v33 = vld [vmem:[#allocation6 + $0xa8] sm:$0xff]  }
  0x3b   :  { %843 = vmatprep.subr.bf16.mxu1 %v1084_v0  ;;  %860 = vmatpush3.bf16.msra.mxu0 %v958_v13  ;;  %v969_v34 = vld [vmem:[#allocation6 + $0xa0] sm:$0xff]   ;;  %v970_v35 = vld [vmem:[#allocation6 + $0x98] sm:$0xff]   ;;  %v738_v36 = vld [vmem:[%s1228_s4] ss:$0 sm:$0xff] }
  0x3c   :  { %861 = vmatprep.subr.bf16.mxu0 %v1084_v0  ;;  %v971_v46 = vld [vmem:[#allocation6 + $0x90] sm:$0xff]   ;;  %v972_v47 = vld [vmem:[#allocation6 + $0x88] sm:$0xff]   ;;  %v973_v48 = vld [vmem:[#allocation6 + $0x80] sm:$0xff]  }
  0x3d   :  { %v974_v49 = vld [vmem:[#allocation6 + $0xf8] sm:$0xff]   ;;  %v975_v50 = vld [vmem:[#allocation6 + $0xf0] sm:$0xff]   ;;  %v976_v51 = vld [vmem:[#allocation6 + $0xe8] sm:$0xff]  }
  0x3e   :  { %844 = vmatpush3.bf16.msra.mxu1 %v952_v7  ;;  %v977_v52 = vld [vmem:[#allocation6 + $0xe0] sm:$0xff]   ;;  %v978_v53 = vld [vmem:[#allocation6 + $0xd8] sm:$0xff]   ;;  %v748_v54 = vld [vmem:[%s1228_s4 + $0x1] ss:$0 sm:$0xff] }
  0x3f   :  { %845 = vmatprep.subr.bf16.mxu1 %v1084_v0  ;;  %862 = vmatpush3.bf16.msra.mxu0 %v959_v14  ;;  %v979_v1 = vld [vmem:[#allocation6 + $0xd0] sm:$0xff]   ;;  %v980_v2 = vld [vmem:[#allocation6 + $0xc8] sm:$0xff]   ;;  %v981_v3 = vld [vmem:[#allocation6 + $0xc0] sm:$0xff]  }
  0x40   :  { %863 = vmatprep.subr.bf16.mxu0 %v1084_v0  ;;  %v982_v4 = vld [vmem:[#allocation7 + $0x38] sm:$0xff]   ;;  %v983_v5 = vld [vmem:[#allocation7 + $0x30] sm:$0xff]   ;;  %v984_v6 = vld [vmem:[#allocation7 + $0x28] sm:$0xff]  }
  0x41   :  { %v985_v7 = vld [vmem:[#allocation7 + $0x20] sm:$0xff]  }
  0x42   :  { %846 = vmatpush3.bf16.msra.mxu1 %v953_v8  ;;  %v986_v8 = vld [vmem:[#allocation7 + $0x18] sm:$0xff]  }
  0x43   :  { %847 = vmatprep.subr.bf16.mxu1 %v1084_v0  ;;  %864 = vmatpush3.bf16.msra.mxu0 %v960_v15 }
  0x44   :  { %865 = vmatprep.subr.bf16.mxu0 %v1084_v0 }
  0x46   :  { %848 = vmatpush3.bf16.msra.mxu1 %v954_v9  ;;  %v758_v9 = vld [vmem:[%s1228_s4 + $0x2] ss:$0 sm:$0xff] }
  0x47   :  { %849 = vmatprep.subr.bf16.mxu1 %v1084_v0  ;;  %866 = vmatpush3.bf16.msra.mxu0 %v961_v16 }
  0x48   :  { %867 = vmatprep.subr.bf16.mxu0 %v1084_v0 }
  0x4a   :  { %850 = vmatpush3.bf16.msra.mxu1 %v955_v10 }
  0x4b   :  { %851 = vmatprep.subr.bf16.mxu1 %v1084_v0  ;;  %868 = vmatpush3.bf16.msra.mxu0 %v962_v17 }
  0x4c   :  { %869 = vmatprep.subr.bf16.mxu0 %v1084_v0 }
  0x4e   :  { %852 = vmatpush3.bf16.msra.mxu1 %v956_v11 }
  0x4f   :  { %853 = vmatprep.subr.bf16.mxu1 %v1084_v0  ;;  %870 = vmatpush3.bf16.msra.mxu0 %v963_v28 }
  0x50   :  { %871 = vmatprep.subr.bf16.mxu0 %v1084_v0 }
  0x52   :  { %854 = vmatpush3.bf16.msra.mxu1 %v957_v12 }
  0x53   :  { %879 = vmatprep.subr.bf16.mxu1 %v1084_v0  ;;  %872 = vmatpush3.bf16.msra.mxu0 %v964_v29 }
  0x54   :  { %873 = vmatprep.subr.bf16.mxu0 %v1084_v0 }
  0x57   :  { %874 = vmatpush3.bf16.msra.mxu0 %v965_v30 }
  0x58   :  { %899 = vmatprep.subr.bf16.mxu0 %v1084_v0 }
  0xf9   :  { %v138_v19 = vpop.f32.mrf.mxu0 }
  0xfa   :  { %v139_v21 = vadd.f32 %v735_v18, %v138_v19  ;;  %v987_v19 = vld [vmem:[#allocation7 + $0x10] sm:$0xff]  }
  0xfb   :  { %v837_v20 = vpop.f32.mrf.mxu0 }
  0xfc   :  { %v145_v25 = vmax.f32 %v139_v21, 0.0  ;;  %v988_v20 = vld [vmem:[#allocation7 + $0x8] sm:$0xff]   ;;  %v989_v21 = vld [vmem:[#allocation7] sm:$0xff]  }
  0xfd   :  { %v141_v22 = vpop.f32.mrf.mxu0 }
  0xfe   :  { %v142_v23 = vadd.f32 %v735_v18, %v141_v22  ;;  %v768_v22 = vld [vmem:[%s1228_s4 + $0x3] ss:$0 sm:$0xff] }
  0xff   :  { %v838_v24 = vpop.f32.mrf.mxu0 }
 0x100   :  { %v146_v26 = vmax.f32 %v142_v23, 0.0 }
 0x102   :  { %v147_v27 = vpack.c.bf16 %v146_v26, %v145_v25 }
 0x104   :  { %856 = vmatmul.mubr.bf16.vlgmr.msra.gmra.mxu1 %v147_v27 }
 0x105   :  { %895 = vmatprep.mubr.msk.bf16.mxu1 %vm1085_vm0, %v1084_v0  ;;  %880 = vmatpush3.bf16.msra.mxu1 %v966_v31 }
 0x106   :  { %881 = vmatprep.subr.bf16.mxu1 %v1084_v0 }
 0x109   :  { %882 = vmatpush3.bf16.msra.mxu1 %v967_v32 }
 0x10a   :  { %883 = vmatprep.subr.bf16.mxu1 %v1084_v0 }
 0x10d   :  { %884 = vmatpush3.bf16.msra.mxu1 %v968_v33 }
 0x10e   :  { %885 = vmatprep.subr.bf16.mxu1 %v1084_v0 }
 0x111   :  { %886 = vmatpush3.bf16.msra.mxu1 %v969_v34 }
 0x112   :  { %887 = vmatprep.subr.bf16.mxu1 %v1084_v0 }
 0x115   :  { %888 = vmatpush3.bf16.msra.mxu1 %v970_v35 }
 0x116   :  { %889 = vmatprep.subr.bf16.mxu1 %v1084_v0 }
 0x119   :  { %890 = vmatpush3.bf16.msra.mxu1 %v971_v46 }
 0x11a   :  { %891 = vmatprep.subr.bf16.mxu1 %v1084_v0 }
 0x11d   :  { %892 = vmatpush3.bf16.msra.mxu1 %v972_v47 }
 0x11e   :  { %893 = vmatprep.subr.bf16.mxu1 %v1084_v0 }
 0x121   :  { %894 = vmatpush3.bf16.msra.mxu1 %v973_v48 }
 0x122   :  { %919 = vmatprep.subr.bf16.mxu1 %v1084_v0 }
 0x1c4   :  { %v253_v37 = vpop.f32.mrf.mxu1 }
 0x1c5   :  { %v254_v39 = vadd.f32 %v738_v36, %v253_v37 }
 0x1c6   :  { %v857_v38 = vpop.f32.mrf.mxu1 }
 0x1c7   :  { %v260_v43 = vmax.f32 %v254_v39, 0.0 }
 0x1c8   :  { %v256_v40 = vpop.f32.mrf.mxu1 }
 0x1c9   :  { %v257_v41 = vadd.f32 %v738_v36, %v256_v40 }
 0x1ca   :  { %v858_v42 = vpop.f32.mrf.mxu1 }
 0x1cb   :  { %v261_v44 = vmax.f32 %v257_v41, 0.0 }
 0x1cd   :  { %v262_v45 = vpack.c.bf16 %v261_v44, %v260_v43 }
 0x1cf   :  { %876 = vmatmul.mubr.bf16.vlgmr.msra.gmra.mxu0 %v262_v45 }
 0x1d0   :  { %915 = vmatprep.mubr.msk.bf16.mxu0 %vm1085_vm0, %v1084_v0  ;;  %900 = vmatpush3.bf16.msra.mxu0 %v974_v49 }
 0x1d1   :  { %901 = vmatprep.subr.bf16.mxu0 %v1084_v0 }
 0x1d4   :  { %902 = vmatpush3.bf16.msra.mxu0 %v975_v50 }
 0x1d5   :  { %903 = vmatprep.subr.bf16.mxu0 %v1084_v0 }
 0x1d8   :  { %904 = vmatpush3.bf16.msra.mxu0 %v976_v51 }
 0x1d9   :  { %905 = vmatprep.subr.bf16.mxu0 %v1084_v0 }
 0x1dc   :  { %906 = vmatpush3.bf16.msra.mxu0 %v977_v52 }
 0x1dd   :  { %907 = vmatprep.subr.bf16.mxu0 %v1084_v0 }
 0x1e0   :  { %908 = vmatpush3.bf16.msra.mxu0 %v978_v53 }
 0x1e1   :  { %909 = vmatprep.subr.bf16.mxu0 %v1084_v0 }
 0x1e4   :  { %910 = vmatpush3.bf16.msra.mxu0 %v979_v1 }
 0x1e5   :  { %911 = vmatprep.subr.bf16.mxu0 %v1084_v0 }
 0x1e8   :  { %912 = vmatpush3.bf16.msra.mxu0 %v980_v2 }
 0x1e9   :  { %913 = vmatprep.subr.bf16.mxu0 %v1084_v0 }
 0x1ec   :  { %914 = vmatpush3.bf16.msra.mxu0 %v981_v3 }
 0x28f   :  { %v370_v55 = vpop.f32.mrf.mxu0 }
 0x290   :  { %v371_v57 = vadd.f32 %v748_v54, %v370_v55 }
 0x291   :  { %v877_v56 = vpop.f32.mrf.mxu0 }
 0x292   :  { %v377_v61 = vmax.f32 %v371_v57, 0.0 }
 0x293   :  { %v373_v58 = vpop.f32.mrf.mxu0 }
 0x294   :  { %v374_v59 = vadd.f32 %v748_v54, %v373_v58 }
 0x295   :  { %v878_v60 = vpop.f32.mrf.mxu0 }
 0x296   :  { %v378_v62 = vmax.f32 %v374_v59, 0.0 }
 0x298   :  { %v379_v63 = vpack.c.bf16 %v378_v62, %v377_v61 }
 0x29a   :  { %896 = vmatmul.mubr.bf16.vlgmr.msra.gmra.mxu1 %v379_v63 }
 0x29b   :  { %935 = vmatprep.mubr.msk.bf16.mxu1 %vm1085_vm0, %v1084_v0  ;;  %920 = vmatpush3.bf16.msra.mxu1 %v982_v4 }
 0x29c   :  { %921 = vmatprep.subr.bf16.mxu1 %v1084_v0 }
 0x29f   :  { %922 = vmatpush3.bf16.msra.mxu1 %v983_v5 }
 0x2a0   :  { %923 = vmatprep.subr.bf16.mxu1 %v1084_v0 }
 0x2a3   :  { %924 = vmatpush3.bf16.msra.mxu1 %v984_v6 }
 0x2a4   :  { %925 = vmatprep.subr.bf16.mxu1 %v1084_v0 }
 0x2a7   :  { %926 = vmatpush3.bf16.msra.mxu1 %v985_v7 }
 0x2a8   :  { %927 = vmatprep.subr.bf16.mxu1 %v1084_v0 }
 0x2ab   :  { %928 = vmatpush3.bf16.msra.mxu1 %v986_v8 }
 0x2ac   :  { %929 = vmatprep.subr.bf16.mxu1 %v1084_v0 }
 0x2af   :  { %930 = vmatpush3.bf16.msra.mxu1 %v987_v19 }
 0x2b0   :  { %931 = vmatprep.subr.bf16.mxu1 %v1084_v0 }
 0x2b3   :  { %932 = vmatpush3.bf16.msra.mxu1 %v988_v20 }
 0x2b4   :  { %933 = vmatprep.subr.bf16.mxu1 %v1084_v0  ;;  %v777_v0 = vld [vmem:[%s1230_s6] ss:$0 sm:$0xff] }
 0x2b7   :  { %934 = vmatpush3.bf16.msra.mxu1 %v989_v21 }
 0x35a   :  { %v487_v10 = vpop.f32.mrf.mxu1 }
 0x35b   :  { %v488_v12 = vadd.f32 %v758_v9, %v487_v10 }
 0x35c   :  { %v897_v11 = vpop.f32.mrf.mxu1 }
 0x35d   :  { %v494_v16 = vmax.f32 %v488_v12, 0.0 }
 0x35e   :  { %v490_v13 = vpop.f32.mrf.mxu1 }
 0x35f   :  { %v491_v14 = vadd.f32 %v758_v9, %v490_v13 }
 0x360   :  { %v898_v15 = vpop.f32.mrf.mxu1 }
 0x361   :  { %v495_v17 = vmax.f32 %v491_v14, 0.0 }
 0x363   :  { %v496_v18 = vpack.c.bf16 %v495_v17, %v494_v16 }
 0x365   :  { %916 = vmatmul.mubr.bf16.vlgmr.msra.gmra.mxu0 %v496_v18 }
 0x425   :  { %v604_v23 = vpop.f32.mrf.mxu0 }
 0x426   :  { %v605_v25 = vadd.f32 %v768_v22, %v604_v23 }
 0x427   :  { %v917_v24 = vpop.f32.mrf.mxu0 }
 0x428   :  { %v611_v29 = vmax.f32 %v605_v25, 0.0 }
 0x429   :  { %v607_v26 = vpop.f32.mrf.mxu0 }
 0x42a   :  { %v608_v27 = vadd.f32 %v768_v22, %v607_v26 }
 0x42b   :  { %v918_v28 = vpop.f32.mrf.mxu0 }
 0x42c   :  { %v612_v30 = vmax.f32 %v608_v27, 0.0 }
 0x42e   :  { %v613_v31 = vpack.c.bf16 %v612_v30, %v611_v29 }
 0x430   :  { %936 = vmatmul.mubr.bf16.vlgmr.msra.gmra.mxu1 %v613_v31 }
 0x4f0   :  { %v719_v32 = vpop.f32.mrf.mxu1 }
 0x4f1   :  { %v720_v33 = vadd.f32 %v777_v0, %v719_v32 }
 0x4f2   :  { %v937_v34 = vpop.f32.mrf.mxu1 }
 0x4f3   :  { %726 = vst [vmem:[%s1231_s7] sm:$0xff] %v720_v33 }
 0x4f4   :  { %v722_v35 = vpop.f32.mrf.mxu1 }
 0x4f5   :  { %v723_v36 = vadd.f32 %v777_v0, %v722_v35 }
 0x4f6   :  { %v938_v37 = vpop.f32.mrf.mxu1 }
 0x4f7   :  { %727 = vst [vmem:[%s1231_s7 + $0x8] sm:$0xff] %v723_v36 }
 0x4f8   :  { %732 = vsyncpa [#allocation3], 1 }
 0x4f9   :  { %733 = vsyncpa [#allocation5], 1 }
 0x4fa   :  { %734 = vsyncpa [#allocation8], 1 }

</bundles_post_ra>
